<compile_context>
chip_gen: v5e
topology: v5e:2x2
jax: 0.10.0
libtpu: 0.0.40
codegen_flags: <defaults>
</compile_context>

<pallas_src>
import functools

import jax
import jax.numpy as jnp
from jax import lax
from jax.experimental import pallas as pl
from jax.experimental.pallas import tpu as pltpu

_NEG_INF = -1e30


def _round_up(x, m):
    return ((x + m - 1) // m) * m


def _vmem_bytes_estimate(bb, bn, Pp, Gdp, Rdp, in_itemsize):
    """Rough VMEM footprint: double-buffered pipeline bufs + scratch + live temps."""
    dbl = 2  # default double-buffering of every BlockSpec operand
    gf = bb * bn * Gdp * in_itemsize * dbl
    rc = bb * Pp * Rdp * in_itemsize * dbl
    w = Rdp * Gdp * 4 * dbl
    rt = 8 * Gdp * 4 * dbl
    mask = 8 * max(bn, 128) * 4 * dbl
    out = bb * Pp * Gdp * 4 * dbl
    scr = 2 * bb * Pp * Gdp * 4 + 2 * bb * Pp * 128 * 4       # q/acc + m/l scratch
    live = 3 * bb * Pp * max(bn, 128) * 4 + bb * bn * Gdp * 4  # corr/p/exp temporaries
    return gf + rc + w + rt + mask + out + scr + live


def _region_grid_kernel(gf_ref, rc_ref, w_ref, rt_ref, mask_ref, out_ref,
                        q_scr, m_scr, l_scr, acc_scr, *,
                        matmul_dtype, apply_mask, approx_recip):
    # gf_ref  : (Bb, bn, Gdp)   grid-feature tile (zero-padded, input_dtype)
    # rc_ref  : (Bb, Pp, Rdp)   region centers (constant along the N axis)
    # w_ref   : (Rdp, Gdp)      Linear weight, PyTorch [out=Rd, in=Gd] layout
    # rt_ref  : (1, Gdp)        r_tilde
    # mask_ref: (1, bn)         additive softmax mask (0 valid, -1e30 padded)
    # out_ref : (Bb, Pp, Gdp)   written once, at the last N step
    n_step = pl.program_id(1)

    @pl.when(n_step == 0)
    def _init():
        # q = rc @ W is independent of N: compute once per batch block.
        # (Linear bias b and the b_i + b_j scalars are constant along the
        #  softmax axis -> they cancel exactly and are omitted.)
        q = lax.dot_general(
            rc_ref[...].astype(matmul_dtype), w_ref[...].astype(matmul_dtype),
            dimension_numbers=(((2,), (0,)), ((), ())),
            preferred_element_type=jnp.float32)
        q_scr[...] = q
        m_scr[...] = jnp.full(m_scr.shape, -jnp.inf, dtype=m_scr.dtype)
        l_scr[...] = jnp.zeros(l_scr.shape, dtype=l_scr.dtype)
        acc_scr[...] = jnp.zeros(acc_scr.shape, dtype=acc_scr.dtype)

    gf_mm = gf_ref[...].astype(matmul_dtype)                   # (Bb, bn, Gdp)

    # Correlation tile: contract the feature dims directly (no transpose).
    corr = lax.dot_general(
        q_scr[...].astype(matmul_dtype), gf_mm,
        dimension_numbers=(((2,), (2,)), ((0,), (0,))),
        preferred_element_type=jnp.float32)                    # (Bb, Pp, bn)
    if apply_mask:
        corr = corr + mask_ref[...][None, :, :]                # mask BEFORE the max

    # Online softmax (f32 statistics) with deferred normalization.
    m_prev = m_scr[...]
    m_new = jnp.maximum(m_prev, jnp.max(corr, axis=-1, keepdims=True))
    alpha = jnp.exp(m_prev - m_new)
    p = jnp.exp(corr - m_new)
    l_scr[...] = alpha * l_scr[...] + jnp.sum(p, axis=-1, keepdims=True)
    acc_scr[...] = alpha * acc_scr[...] + lax.dot_general(
        p.astype(matmul_dtype), gf_mm,
        dimension_numbers=(((2,), (1,)), ((0,), (0,))),
        preferred_element_type=jnp.float32)                    # (Bb, Pp, Gdp)
    m_scr[...] = m_new

    @pl.when(n_step == pl.num_programs(1) - 1)
    def _finalize():
        agg = acc_scr[...] * pl.reciprocal(l_scr[...], approx=approx_recip)
        # diff = agg - r_tilde; F.normalize(diff, p=2, dim=-1), eps = 1e-12.
        diff = agg - rt_ref[...][None, :, :]
        norm = jnp.sqrt(jnp.sum(diff * diff, axis=-1, keepdims=True))
        inv_norm = pl.reciprocal(jnp.maximum(norm, 1e-12), approx=False)
        out_ref[...] = (diff * inv_norm).astype(out_ref.dtype)


def region_grid_aggregator(grid_features, region_centers, params, *,
                           input_dtype=jnp.bfloat16,
                           matmul_dtype=jnp.bfloat16,
                           block_b=None, block_n=None):
    """grid_features: [B, N, Gd], region_centers: [B, P, Rd] -> [B, P, Gd] f32."""
    B, N, Gd = grid_features.shape
    _, P, Rd = region_centers.shape

    # Padded sizes: only the output feature dim needs 128 lanes (unmasked vst);
    # N and Rd are full-dim (or 128-tiled) blocks so 8-alignment suffices.
    Pp = _round_up(P, 8)
    Gdp = _round_up(Gd, 128)
    Rdp = _round_up(Rd, 8)
    Np8 = _round_up(N, 8)

    in_itemsize = jnp.dtype(input_dtype).itemsize

    # Per-generation VMEM budget (v5e/v6e 128 MiB, v7x 64 MiB physical).
    try:
        vmem_cap = int(getattr(pltpu.get_tpu_info(), "vmem_capacity_bytes",
                               64 * 2**20))
    except Exception:
        vmem_cap = 64 * 2**20  # conservative fallback works on all generations
    vmem_budget = int(vmem_cap * 0.55)

    # block_n: large enough to keep gf DMA near the HBM roofline; a multiple of
    # 128 whenever it tiles N, or exactly the (8-aligned) full N for one tile.
    if block_n is None:
        block_n = Np8 if Np8 <= 512 else 512
    # block_b: as many batch elements as the budget allows, capped so the
    # "parallel" batch axis keeps >= 2 steps when B >= 2 (feeds both v7x TCs).
    if block_b is None:
        block_b = max(1, min(8, pl.cdiv(B, 2)))
        while (block_b > 1 and
               _vmem_bytes_estimate(block_b, block_n, Pp, Gdp, Rdp,
                                    in_itemsize) > vmem_budget):
            block_b -= 1
    while (block_n > 128 and
           _vmem_bytes_estimate(block_b, block_n, Pp, Gdp, Rdp,
                                in_itemsize) > vmem_budget):
        block_n = max(128, _round_up(block_n // 2, 128))

    if block_n >= Np8:
        block_n = Np8
        Np = Np8
    else:
        Np = _round_up(N, block_n)
    Bp = _round_up(B, block_b)

    f32 = jnp.float32
    gf_p = jnp.pad(grid_features.astype(input_dtype),
                   ((0, Bp - B), (0, Np - N), (0, Gdp - Gd)))
    rc_p = jnp.pad(region_centers.astype(input_dtype),
                   ((0, Bp - B), (0, Pp - P), (0, Rdp - Rd)))
    w_p = jnp.pad(params["w"].astype(f32), ((0, Rdp - Rd), (0, Gdp - Gd)))
    rt_p = jnp.pad(params["r_tilde"].astype(f32).reshape(1, Gd),
                   ((0, 0), (0, Gdp - Gd)))
    # Additive mask: 0 on valid grid columns, -1e30 on padded ones.
    mask_p = jnp.where(jnp.arange(Np) < N, 0.0, _NEG_INF).astype(f32)[None, :]
    apply_mask = Np > N

    kernel = functools.partial(
        _region_grid_kernel,
        matmul_dtype=matmul_dtype,
        apply_mask=apply_mask,
        approx_recip=bool(jnp.dtype(matmul_dtype) != jnp.dtype(jnp.float32)))

    est = _vmem_bytes_estimate(block_b, block_n, Pp, Gdp, Rdp, in_itemsize)
    vmem_limit = int(min(vmem_cap * 0.9, max(32 * 2**20, est * 2)))

    out_p = pl.pallas_call(
        kernel,
        out_shape=jax.ShapeDtypeStruct((Bp, Pp, Gdp), jnp.float32),
        grid_spec=pltpu.PrefetchScalarGridSpec(
            num_scalar_prefetch=0,
            grid=(Bp // block_b, Np // block_n),
            in_specs=[
                pl.BlockSpec((block_b, block_n, Gdp), lambda b, n: (b, n, 0)),
                pl.BlockSpec((block_b, Pp, Rdp), lambda b, n: (b, 0, 0)),
                pl.BlockSpec((Rdp, Gdp), lambda b, n: (0, 0)),
                pl.BlockSpec((1, Gdp), lambda b, n: (0, 0)),
                pl.BlockSpec((1, block_n), lambda b, n: (0, n)),
            ],
            out_specs=pl.BlockSpec((block_b, Pp, Gdp), lambda b, n: (b, 0, 0)),
            scratch_shapes=[
                pltpu.VMEM((block_b, Pp, Gdp), jnp.float32),   # q = rc @ W
                pltpu.VMEM((block_b, Pp, 1), jnp.float32),     # online-softmax m
                pltpu.VMEM((block_b, Pp, 1), jnp.float32),     # online-softmax l
                pltpu.VMEM((block_b, Pp, Gdp), jnp.float32),   # acc
            ]),
        compiler_params=pltpu.CompilerParams(
            dimension_semantics=("parallel", "arbitrary"),
            vmem_limit_bytes=vmem_limit),
    )(gf_p, rc_p, w_p, rt_p, mask_p)

    return out_p[:B, :P, :Gd]


def reference_jax(grid_features, region_centers, params):
    """Pure-JAX reference of the PyTorch forward (biases included)."""
    gf = grid_features.astype(jnp.float32)
    rc = region_centers.astype(jnp.float32)
    proj = jnp.einsum("bng,rg->bnr", gf, params["w"]) + params["b"]
    corr = jnp.einsum("bpr,bnr->bpn", rc, proj) + params["b_i"] + params["b_j"]
    attn = jax.nn.softmax(corr, axis=-1)
    agg = jnp.einsum("bpn,bng->bpg", attn, gf)
    diff = agg - params["r_tilde"][None, None, :]
    norm = jnp.sqrt(jnp.sum(diff * diff, axis=-1, keepdims=True))
    return diff / jnp.maximum(norm, 1e-12)


if __name__ == "__main__":
    # Small shapes consistent with the module: B batches, N = M*k grid patches,
    # grid_feature_dim Gd, region_feature_dim Rd, P regions.
    B, N, Gd, Rd, P = 2, 16, 32, 64, 8

    key = jax.random.PRNGKey(0)
    k_gf, k_rc, k_w, k_b, k_rt, k_bi, k_bj = jax.random.split(key, 7)

    grid_features = jax.random.normal(k_gf, (B, N, Gd), dtype=jnp.float32)
    region_centers = jax.random.normal(k_rc, (B, P, Rd), dtype=jnp.float32)

    # Deterministic synthetic parameters (shapes match the PyTorch module).
    params = {
        "w": jax.random.normal(k_w, (Rd, Gd), dtype=jnp.float32) * 0.1,   # Linear weight [out, in]
        "b": jax.random.normal(k_b, (Rd,), dtype=jnp.float32) * 0.1,      # Linear bias (softmax-invariant)
        "r_tilde": jax.random.normal(k_rt, (Gd,), dtype=jnp.float32),
        "b_i": jax.random.normal(k_bi, (1,), dtype=jnp.float32),
        "b_j": jax.random.normal(k_bj, (1,), dtype=jnp.float32),
    }

    ref = reference_jax(grid_features, region_centers, params)

    # 1) Exact-dtype path (f32 end to end) — tight check against the PyTorch math.
    out_f32 = region_grid_aggregator(grid_features, region_centers, params,
                                     input_dtype=jnp.float32,
                                     matmul_dtype=jnp.float32)
    out_f32 = jax.block_until_ready(out_f32)
    assert out_f32.shape == (B, P, Gd)
    assert jnp.allclose(out_f32, ref, atol=5e-5, rtol=1e-4), "f32 kernel mismatch"

    # 2) Default fast path: bf16 HBM stream + bf16 MXU feeds, f32 accumulation.
    out_bf16 = region_grid_aggregator(grid_features, region_centers, params)
    out_bf16 = jax.block_until_ready(out_bf16)
    assert out_bf16.shape == (B, P, Gd)
    assert bool(jnp.max(jnp.abs(out_bf16 - ref)) < 0.1), "bf16 kernel mismatch"

    print("KERNEL_OK")
</pallas_src>

<mosaic_0001>
module attributes {stable_mosaic.version = 11 : i64} {
  func.func @_region_grid_kernel(%arg0: i32, %arg1: i32, %arg2: memref<1x16x128xf32, #tpu.memory_space<vmem>>, %arg3: memref<1x8x64xf32, #tpu.memory_space<vmem>>, %arg4: memref<64x128xf32, #tpu.memory_space<vmem>>, %arg5: memref<1x128xf32, #tpu.memory_space<vmem>>, %arg6: memref<1x16xf32, #tpu.memory_space<vmem>>, %arg7: memref<1x8x128xf32, #tpu.memory_space<vmem>>, %arg8: memref<1x8x128xf32, #tpu.memory_space<vmem>>, %arg9: memref<1x8x1xf32, #tpu.memory_space<vmem>>, %arg10: memref<1x8x1xf32, #tpu.memory_space<vmem>>, %arg11: memref<1x8x128xf32, #tpu.memory_space<vmem>>) attributes {dimension_semantics = [#tpu.dimension_semantics<parallel>, #tpu.dimension_semantics<arbitrary>], iteration_bounds = array<i64: 2, 1>, scalar_prefetch = 0 : i64, scratch_operands = 4 : i64, tpu.core_type = #tpu.core_type<tc>, window_params = [{transform_indices = @transform_0, window_bounds = array<i64: 1, 16, 128>}, {transform_indices = @transform_1, window_bounds = array<i64: 1, 8, 64>}, {pipeline_mode = #tpu.pipeline_mode<synchronous>, transform_indices = @transform_2, window_bounds = array<i64: 64, 128>}, {pipeline_mode = #tpu.pipeline_mode<synchronous>, transform_indices = @transform_3, window_bounds = array<i64: 1, 128>}, {transform_indices = @transform_4, window_bounds = array<i64: 1, 16>}, {transform_indices = @transform_5, window_bounds = array<i64: 1, 8, 128>}]} {
    %c0_i32 = arith.constant 0 : i32
    %0 = arith.cmpi eq, %arg1, %c0_i32 : i32
    %1 = arith.extui %0 : i1 to i32
    %c0_i32_0 = arith.constant 0 : i32
    %2 = arith.cmpi ne, %1, %c0_i32_0 : i32
    scf.if %2 {
      %c0_29 = arith.constant 0 : index
      %c0_30 = arith.constant 0 : index
      %c0_31 = arith.constant 0 : index
      %31 = vector.load %arg3[%c0_29, %c0_30, %c0_31] : memref<1x8x64xf32, #tpu.memory_space<vmem>>, vector<1x8x64xf32>
      %c0_32 = arith.constant 0 : index
      %c0_33 = arith.constant 0 : index
      %32 = vector.load %arg4[%c0_32, %c0_33] : memref<64x128xf32, #tpu.memory_space<vmem>>, vector<64x128xf32>
      %cst_34 = arith.constant dense<0.000000e+00> : vector<1x8x128xf32>
      %33 = tpu.matmul %31, %32, %cst_34 {dimension_numbers = #tpu.dot_dimension_numbers<[2], [0], [0, 1], [1], [0, 0, 0, 1, 1, 1], [], []>} : vector<1x8x64xf32>, vector<64x128xf32>, vector<1x8x128xf32> -> vector<1x8x128xf32>
      %c0_35 = arith.constant 0 : index
      %c0_36 = arith.constant 0 : index
      %c0_37 = arith.constant 0 : index
      %34 = vector.load %arg8[%c0_35, %c0_36, %c0_37] : memref<1x8x128xf32, #tpu.memory_space<vmem>>, vector<1x8x128xf32>
      tpu.vector_store %arg8[%c0_35, %c0_36, %c0_37], %33 {strides = array<i32>} : memref<1x8x128xf32, #tpu.memory_space<vmem>>, vector<1x8x128xf32>,
      %cst_38 = arith.constant 0xFF800000 : f32
      %35 = vector.broadcast %cst_38 : f32 to vector<1x8x1xf32>
      %c0_39 = arith.constant 0 : index
      %c0_40 = arith.constant 0 : index
      %c0_41 = arith.constant 0 : index
      %36 = vector.load %arg9[%c0_39, %c0_40, %c0_41] : memref<1x8x1xf32, #tpu.memory_space<vmem>>, vector<1x8x1xf32>
      tpu.vector_store %arg9[%c0_39, %c0_40, %c0_41], %35 {strides = array<i32>} : memref<1x8x1xf32, #tpu.memory_space<vmem>>, vector<1x8x1xf32>,
      %cst_42 = arith.constant 0.000000e+00 : f32
      %37 = vector.broadcast %cst_42 : f32 to vector<1x8x1xf32>
      %c0_43 = arith.constant 0 : index
      %c0_44 = arith.constant 0 : index
      %c0_45 = arith.constant 0 : index
      %38 = vector.load %arg10[%c0_43, %c0_44, %c0_45] : memref<1x8x1xf32, #tpu.memory_space<vmem>>, vector<1x8x1xf32>
      tpu.vector_store %arg10[%c0_43, %c0_44, %c0_45], %37 {strides = array<i32>} : memref<1x8x1xf32, #tpu.memory_space<vmem>>, vector<1x8x1xf32>,
      %cst_46 = arith.constant 0.000000e+00 : f32
      %39 = vector.broadcast %cst_46 : f32 to vector<1x8x128xf32>
      %c0_47 = arith.constant 0 : index
      %c0_48 = arith.constant 0 : index
      %c0_49 = arith.constant 0 : index
      %40 = vector.load %arg11[%c0_47, %c0_48, %c0_49] : memref<1x8x128xf32, #tpu.memory_space<vmem>>, vector<1x8x128xf32>
      tpu.vector_store %arg11[%c0_47, %c0_48, %c0_49], %39 {strides = array<i32>} : memref<1x8x128xf32, #tpu.memory_space<vmem>>, vector<1x8x128xf32>,
    } else {
    }
    %c0 = arith.constant 0 : index
    %c0_1 = arith.constant 0 : index
    %c0_2 = arith.constant 0 : index
    %3 = vector.load %arg2[%c0, %c0_1, %c0_2] : memref<1x16x128xf32, #tpu.memory_space<vmem>>, vector<1x16x128xf32>
    %c0_3 = arith.constant 0 : index
    %c0_4 = arith.constant 0 : index
    %c0_5 = arith.constant 0 : index
    %4 = vector.load %arg8[%c0_3, %c0_4, %c0_5] : memref<1x8x128xf32, #tpu.memory_space<vmem>>, vector<1x8x128xf32>
    %cst = arith.constant dense<0.000000e+00> : vector<1x8x16xf32>
    %5 = tpu.matmul %4, %3, %cst {dimension_numbers = #tpu.dot_dimension_numbers<[2], [2], [1], [1], [0, 0, 0, 1, 1, 1], [0], [0]>} : vector<1x8x128xf32>, vector<1x16x128xf32>, vector<1x8x16xf32> -> vector<1x8x16xf32>
    %c0_6 = arith.constant 0 : index
    %c0_7 = arith.constant 0 : index
    %c0_8 = arith.constant 0 : index
    %6 = vector.load %arg9[%c0_6, %c0_7, %c0_8] : memref<1x8x1xf32, #tpu.memory_space<vmem>>, vector<1x8x1xf32>
    %cst_9 = arith.constant dense<0xFF800000> : vector<1x8xf32>
    %7 = vector.multi_reduction <maximumf>, %5, %cst_9 [2] : vector<1x8x16xf32> to vector<1x8xf32>
    %8 = vector.shape_cast %7 : vector<1x8xf32> to vector<1x8x1xf32>
    %9 = arith.maximumf %6, %8 : vector<1x8x1xf32>
    %10 = arith.subf %6, %9 : vector<1x8x1xf32>
    %11 = math.exp %10 : vector<1x8x1xf32>
    %12 = vector.broadcast %9 : vector<1x8x1xf32> to vector<1x8x16xf32>
    %13 = arith.subf %5, %12 : vector<1x8x16xf32>
    %14 = math.exp %13 : vector<1x8x16xf32>
    %c0_10 = arith.constant 0 : index
    %c0_11 = arith.constant 0 : index
    %c0_12 = arith.constant 0 : index
    %15 = vector.load %arg10[%c0_10, %c0_11, %c0_12] : memref<1x8x1xf32, #tpu.memory_space<vmem>>, vector<1x8x1xf32>
    %16 = arith.mulf %11, %15 : vector<1x8x1xf32>
    %cst_13 = arith.constant dense<0.000000e+00> : vector<1x8xf32>
    %17 = vector.multi_reduction <add>, %14, %cst_13 [2] : vector<1x8x16xf32> to vector<1x8xf32>
    %18 = vector.shape_cast %17 : vector<1x8xf32> to vector<1x8x1xf32>
    %19 = arith.addf %16, %18 : vector<1x8x1xf32>
    %c0_14 = arith.constant 0 : index
    %c0_15 = arith.constant 0 : index
    %c0_16 = arith.constant 0 : index
    %20 = vector.load %arg10[%c0_14, %c0_15, %c0_16] : memref<1x8x1xf32, #tpu.memory_space<vmem>>, vector<1x8x1xf32>
    tpu.vector_store %arg10[%c0_14, %c0_15, %c0_16], %19 {strides = array<i32>} : memref<1x8x1xf32, #tpu.memory_space<vmem>>, vector<1x8x1xf32>,
    %c0_17 = arith.constant 0 : index
    %c0_18 = arith.constant 0 : index
    %c0_19 = arith.constant 0 : index
    %21 = vector.load %arg11[%c0_17, %c0_18, %c0_19] : memref<1x8x128xf32, #tpu.memory_space<vmem>>, vector<1x8x128xf32>
    %22 = vector.broadcast %11 : vector<1x8x1xf32> to vector<1x8x128xf32>
    %23 = arith.mulf %22, %21 : vector<1x8x128xf32>
    %cst_20 = arith.constant dense<0.000000e+00> : vector<1x8x128xf32>
    %24 = tpu.matmul %14, %3, %cst_20 {dimension_numbers = #tpu.dot_dimension_numbers<[2], [1], [1], [2], [0, 0, 0, 1, 1, 2], [0], [0]>} : vector<1x8x16xf32>, vector<1x16x128xf32>, vector<1x8x128xf32> -> vector<1x8x128xf32>
    %25 = arith.addf %23, %24 : vector<1x8x128xf32>
    %c0_21 = arith.constant 0 : index
    %c0_22 = arith.constant 0 : index
    %c0_23 = arith.constant 0 : index
    %26 = vector.load %arg11[%c0_21, %c0_22, %c0_23] : memref<1x8x128xf32, #tpu.memory_space<vmem>>, vector<1x8x128xf32>
    tpu.vector_store %arg11[%c0_21, %c0_22, %c0_23], %25 {strides = array<i32>} : memref<1x8x128xf32, #tpu.memory_space<vmem>>, vector<1x8x128xf32>,
    %c0_24 = arith.constant 0 : index
    %c0_25 = arith.constant 0 : index
    %c0_26 = arith.constant 0 : index
    %27 = vector.load %arg9[%c0_24, %c0_25, %c0_26] : memref<1x8x1xf32, #tpu.memory_space<vmem>>, vector<1x8x1xf32>
    tpu.vector_store %arg9[%c0_24, %c0_25, %c0_26], %9 {strides = array<i32>} : memref<1x8x1xf32, #tpu.memory_space<vmem>>, vector<1x8x1xf32>,
    %c0_i32_27 = arith.constant 0 : i32
    %28 = arith.cmpi eq, %arg1, %c0_i32_27 : i32
    %29 = arith.extui %28 : i1 to i32
    %c0_i32_28 = arith.constant 0 : i32
    %30 = arith.cmpi ne, %29, %c0_i32_28 : i32
    scf.if %30 {
      %c0_29 = arith.constant 0 : index
      %c0_30 = arith.constant 0 : index
      %c0_31 = arith.constant 0 : index
      %31 = vector.load %arg11[%c0_29, %c0_30, %c0_31] : memref<1x8x128xf32, #tpu.memory_space<vmem>>, vector<1x8x128xf32>
      %c0_32 = arith.constant 0 : index
      %c0_33 = arith.constant 0 : index
      %c0_34 = arith.constant 0 : index
      %32 = vector.load %arg10[%c0_32, %c0_33, %c0_34] : memref<1x8x1xf32, #tpu.memory_space<vmem>>, vector<1x8x1xf32>
      %33 = tpu.reciprocal %32 : vector<1x8x1xf32> -> vector<1x8x1xf32>
      %34 = vector.broadcast %33 : vector<1x8x1xf32> to vector<1x8x128xf32>
      %35 = arith.mulf %31, %34 : vector<1x8x128xf32>
      %c0_35 = arith.constant 0 : index
      %c0_36 = arith.constant 0 : index
      %36 = vector.load %arg5[%c0_35, %c0_36] : memref<1x128xf32, #tpu.memory_space<vmem>>, vector<1x128xf32>
      %37 = vector.shape_cast %36 : vector<1x128xf32> to vector<1x1x128xf32>
      %38 = vector.broadcast %37 : vector<1x1x128xf32> to vector<1x8x128xf32>
      %39 = arith.subf %35, %38 : vector<1x8x128xf32>
      %40 = arith.mulf %39, %39 : vector<1x8x128xf32>
      %cst_37 = arith.constant dense<0.000000e+00> : vector<1x8xf32>
      %41 = vector.multi_reduction <add>, %40, %cst_37 [2] : vector<1x8x128xf32> to vector<1x8xf32>
      %42 = vector.shape_cast %41 : vector<1x8xf32> to vector<1x8x1xf32>
      %43 = math.sqrt %42 : vector<1x8x1xf32>
      %cst_38 = arith.constant 9.99999996E-13 : f32
      %44 = vector.broadcast %cst_38 : f32 to vector<1x8x1xf32>
      %45 = arith.maximumf %43, %44 : vector<1x8x1xf32>
      %46 = tpu.reciprocal %45 : vector<1x8x1xf32> -> vector<1x8x1xf32>
      %47 = vector.broadcast %46 : vector<1x8x1xf32> to vector<1x8x128xf32>
      %48 = arith.mulf %39, %47 : vector<1x8x128xf32>
      %c0_39 = arith.constant 0 : index
      %c0_40 = arith.constant 0 : index
      %c0_41 = arith.constant 0 : index
      %49 = vector.load %arg7[%c0_39, %c0_40, %c0_41] : memref<1x8x128xf32, #tpu.memory_space<vmem>>, vector<1x8x128xf32>
      tpu.vector_store %arg7[%c0_39, %c0_40, %c0_41], %48 {strides = array<i32>} : memref<1x8x128xf32, #tpu.memory_space<vmem>>, vector<1x8x128xf32>,
    } else {
    }
    return
  }
  func.func @transform_0(%arg0: i32, %arg1: i32) -> (i32, i32, i32) {
    %c0_i32 = arith.constant 0 : i32
    %c0_i32_0 = arith.constant 0 : i32
    return %arg0, %arg1, %c0_i32 : i32, i32, i32
  }
  func.func @transform_1(%arg0: i32, %arg1: i32) -> (i32, i32, i32) {
    %c0_i32 = arith.constant 0 : i32
    %c0_i32_0 = arith.constant 0 : i32
    %c0_i32_1 = arith.constant 0 : i32
    return %arg0, %c0_i32, %c0_i32_0 : i32, i32, i32
  }
  func.func @transform_2(%arg0: i32, %arg1: i32) -> (i32, i32) {
    %c0_i32 = arith.constant 0 : i32
    %c0_i32_0 = arith.constant 0 : i32
    %c0_i32_1 = arith.constant 0 : i32
    return %c0_i32, %c0_i32_0 : i32, i32
  }
  func.func @transform_3(%arg0: i32, %arg1: i32) -> (i32, i32) {
    %c0_i32 = arith.constant 0 : i32
    %c0_i32_0 = arith.constant 0 : i32
    %c0_i32_1 = arith.constant 0 : i32
    return %c0_i32, %c0_i32_0 : i32, i32
  }
  func.func @transform_4(%arg0: i32, %arg1: i32) -> (i32, i32) {
    %c0_i32 = arith.constant 0 : i32
    %c0_i32_0 = arith.constant 0 : i32
    return %c0_i32, %arg1 : i32, i32
  }
  func.func @transform_5(%arg0: i32, %arg1: i32) -> (i32, i32, i32) {
    %c0_i32 = arith.constant 0 : i32
    %c0_i32_0 = arith.constant 0 : i32
    %c0_i32_1 = arith.constant 0 : i32
    return %arg0, %c0_i32, %c0_i32_0 : i32, i32, i32
  }
}

</mosaic_0001>

<bundles_post_ra>
// kernel: tpu_custom_call.1
= control target key start
LH: loop header
LB: loop body
LE: loop exit
PB: predicated region body
PF: predicated region fallthrough
CT: control target
= control target key end

     0   :  { %s1171_s0 = inlined_call_operand.hbm [shape: f32[2,16,128], index: 0, kind: input, shape index: {}]   ;;  %s1172_s1 = inlined_call_operand.hbm [shape: f32[2,8,64], index: 1, kind: input, shape index: {}]   ;;  %s1173_s2 = inlined_call_operand.hbm [shape: f32[64,128], index: 2, kind: input, shape index: {}]   ;;  %s1174_s3 = inlined_call_operand.vmem [shape: f32[1,128], index: 3, kind: input, shape index: {}]   ;;  %s1175_s4 = inlined_call_operand.vmem [shape: f32[1,16], index: 4, kind: input, shape index: {}]   ;;  %s1176_s5 = inlined_call_operand.hbm [shape: f32[2,8,128], index: 5, kind: output, shape index: {}]  }
   0x1   :  { %1182 = sst [smem:[#allocation21_spill]] %s1173_s2 }
   0x2   :  { %10 = vsyncpa [#allocation7], 0 }
   0x3   :  { %12 = vsyncpa [#allocation7 + $0x1], 0 }
   0x4   :  { %13 = vsyncpa [#allocation10], 0 }
   0x5   :  { %15 = vsyncpa [#allocation10 + $0x1], 0 }
   0x6   :  { %16 = vsyncpa [#allocation8], 0 }
   0x7   :  { %18 = vsyncpa [#allocation8 + $0x1], 0  ;;  %s995_s18 = smov 0   ;;  %s997_s19 = smov 0  }
   0x8   :  { %s999_s20 = smov 0   ;;  %s1001_s21 = smov 0  }
   0x9   :  { %s1003_s22 = smov 0   ;;  %s1005_s4 = smov 0  }
   0xa LB: > { %1183 = sst [smem:[#allocation17_spill]] %s945_s20  ;;  %s1026_s23 = sadd.s32 4294967295, %s957_s4   ;;  %s957_s4 = sphi %s1005_s4, %s24_s4   ;;  %s953_s22 = sphi %s1003_s22, %s1202_s22   ;;  %s949_s21 = sphi %s1001_s21, %s1201_s21   ;;  %s945_s20 = sphi %s999_s20, %s1197_s20   ;;  %s941_s19 = sphi %s997_s19, %s1200_s19   ;;  %s937_s18 = sphi %s995_s18, %s1199_s18  }
   0xb   : > { %s658_s24 = sadd.s32 4294967294, %s957_s4   ;;  %p58_p0 = scmp.ne.s32.totalorder %s941_s19, %s937_s18 }
   0xc   : > { %p59_p1 = scmp.eq.s32.totalorder %s1026_s23, 0  ;;  %p176_p2 = scmp.eq.s32.totalorder %s1026_s23, 1 }
   0xd   : > { %p182_p3 = scmp.eq.s32.totalorder %s658_s24, 1  ;;  %p659_p5 = scmp.ge.s32.totalorder %s957_s4, 1 }
   0xe   : > { %p1035_p4 = por %p59_p1, %p58_p0  ;;  %p189_p7 = scmp.lt.s32.totalorder %s957_s4, 3 }
   0xf   : > { %p1040_p6 = por %p182_p3, %p58_p0  ;;  %s1187_s2 = sld [smem:[#allocation21_spill]] }
  0x10   : > { %p1048_p8 = pnand %p659_p5, %p189_p7  ;;  %s959_s6 = smov [#allocation11]  }
  0x11   : > { %s1185_s26 = scalar_select %p1040_p6, 1, 0 }
  0x12   : > { %p690_p9 = pneg %p1048_p8  ;;  %s202_s7 = sshll.u32 %s959_s6, 4  ;;  %s203_s7 = int_to_ptr.vmem [resolvable:$true] %s202_s7 }
  0x13   : > { %1186 = sst [smem:[#allocation18_spill]] %s1185_s26  ;;  %p662_p11 = scmp.ge.s32.totalorder %s957_s4, 2 }
  0x14   : > { %p691_p10 = pnand %p690_p9, %p59_p1  ;;  %s1177_s8 = smov 128  }
  0x15   : > { %s200_s29 = sshll.u32 %s1187_s2, 4  ;;  %s1178_s9 = smov 8   ;;  %s201_s29 = int_to_ptr.hbm [resolvable:$true] %s200_s29 }
  0x16   : > { %693 = dma.hbm_to_vmem [thread:$0]  (!%p691_p10), %s201_s29, 1024, %s203_s7, [#allocation10], %s1177_s8, %s1177_s8, %s1178_s9  }
  0x17   : > { %s36_s10 = sadd.s32 1, %s953_s22  ;;  %s45_s11 = sadd.s32 1, %s945_s20 }
  0x18   : > { %p38_p12 = scmp.ge.s32.totalorder %s36_s10, 2  ;;  %p52_p13 = scmp.ne.s32.totalorder %s945_s20, %s941_s19 }
  0x19   : > { %p53_p0 = scmp.eq.s32.totalorder %s957_s4, 0  ;;  %p706_p7 = scmp.lt.s32.totalorder %s957_s4, 2 }
  0x1a   : > { %s1204_s10 = smov (%p38_p12, %s36_s10), 0  ;;  %p1073_p5 = por %p176_p2, %p52_p13 }
  0x1b   : > { %1189 = sst [smem:[#allocation19_spill]] %s1204_s10  ;;  %p1067_p3 = por %p53_p0, %p52_p13 }
  0x1c   : > { %s40_s14 = ssub.s32 %s953_s22, %s1204_s10  ;;  %s225_s15 = sand.u32 1, %s945_s20  }
  0x1d   : > { %p43_p9 = scmp.eq.s32.totalorder %s40_s14, 0  ;;  %s663_s16 = sshll.u32 %s225_s15, 4 }
  0x1e   : > { %s679_s24 = sshll.u32 %s953_s22, 4  ;;  %s229_s6 = scalar_lea.vmem [#allocation6], %s663_s16 }
  0x1f   : > { %s1082_s17 = scalar_select %p43_p9, %s945_s20, %s45_s11  }
  0x20   : > { %s236_s29 = scalar_lea.hbm %s1171_s0, %s679_s24  ;;  %s239_s7 = sshll.u32 %s229_s6, 4  ;;  %s240_s7 = int_to_ptr.vmem [resolvable:$true] %s239_s7 }
  0x21   : > { %1192 = sst [smem:[#allocation20_spill]] %s1082_s17  ;;  %s237_s8 = sshll.u32 %s236_s29, 4  ;;  %s238_s8 = int_to_ptr.hbm [resolvable:$true] %s237_s8 }
  0x22   : > { %p695_p2 = pnand %p706_p7, %p1067_p3  ;;  %s249_s9 = sand.u32 1, %s957_s4  }
  0x23   : > { %s666_s2 = sshll.u32 %s225_s15, 3  ;;  %s226_s14 = scalar_lea.sflag [#allocation7], %s225_s15 }
  0x24   : > { %s1193_s10 = smov 8   ;;  %s1194_s26 = smov 128  }
  0x25   : > { %697 = dma.hbm_to_vmem [thread:$0]  (!%p695_p2), %s238_s8, 256, %s240_s7, %s226_s14, %s1194_s26, %s1194_s26, %s1193_s10  }
  0x26   : > { %s667_s11 = sshll.u32 %s953_s22, 3  ;;  %s253_s24 = scalar_lea.vmem [#allocation9], %s666_s2 }
  0x27   : > { %s257_s27 = scalar_lea.hbm %s1172_s1, %s667_s11  ;;  %s261_s16 = sshll.u32 %s253_s24, 4  ;;  %s262_s16 = int_to_ptr.vmem [resolvable:$true] %s261_s16 }
  0x28   : > { %s259_s28 = sshll.u32 %s257_s27, 4  ;;  %s250_s29 = scalar_lea.sflag [#allocation10], %s249_s9  ;;  %s260_s28 = int_to_ptr.hbm [resolvable:$true] %s259_s28 }
  0x29   : > { %700 = dma.hbm_to_vmem [thread:$0]  (!%p695_p2), %s260_s28, 128, %s262_s16, %s250_s29  }
  0x2a   : > { %270 = sbr.rel (%p1048_p8) target bundleno = 968 (0x3c8), region = 40  ;;  %s1101_s12 = sand.u32 (!%p1048_p8), 1, %s941_s19  }
  0x2b   : > { %s669_s26 = sshll.u32 (!%p1048_p8), %s1101_s12, 4  ;;  %s273_s8 = scalar_lea.sflag (!%p1048_p8), [#allocation7], %s1101_s12 }
  0x2c   : > { %s276_s20 = scalar_lea.vmem (!%p1048_p8), [#allocation6], %s669_s26 }
  0x2f   : > { %920 = dma.done.wait (%p1035_p4), %s273_s8, 256  }
  0x30   : > { %922 = vsyncadd (%p1035_p4), %s273_s8, 4294967040  ;;  %s282_s2 = sand.u32 1, %s1026_s23   ;;  %s670_s30 = sshll.u32 %s1101_s12, 3 }
  0x31   : > { %s283_s9 = scalar_lea.sflag [#allocation10], %s282_s2  ;;  %s286_s10 = scalar_lea.vmem [#allocation9], %s670_s30 }
  0x32   : > { %924 = dma.done.wait (%p1035_p4), %s283_s9, 128  }
  0x33   : > { %926 = vsyncadd (%p1035_p4), %s283_s9, 4294967168 }
  0x34   : > { %928 = dma.done.wait (%p59_p1), [#allocation10], 1024  }
  0x35   : > { %930 = vsyncadd (%p59_p1), [#allocation10], 4294966272  ;;  %v343_v0 = vld [vmem:[#allocation11 + $0x38] sm:$0xff]  ;;  %v342_v1 = vld [vmem:[#allocation11 + $0x30] sm:$0xff]  ;;  %vm344_vm0 = vcmask 523264   ;;  %vm369_vm1 = vcmask 7168  }
  0x36   : > { %356 = vmatpush.msra.mxu0 %v343_v0  ;;  %v341_v2 = vld [vmem:[#allocation11 + $0x28] sm:$0xff]  ;;  %v340_v4 = vld [vmem:[#allocation11 + $0x20] sm:$0xff]  ;;  %v339_v6 = vld [vmem:[#allocation11 + $0x18] sm:$0xff]  ;;  %v962_v12 = vmov -inf   ;;  %vm397_vm2 = vcmask 130048   ;;  %v963_v15 = vmov 0  }
  0x37   : > { %v374_v3 = vld [vmem:[%s276_s20 + $0x8] sm:$0xff]  ;;  %v373_v5 = vld [vmem:[%s276_s20] sm:$0xff]  ;;  %370 = vst.msk [vmem:[#allocation3] sm:$0xff] %vm369_vm1, %v962_v12  ;;  %763 = vset.pattern.permute.xlu0 %v963_v15  ;;  %764 = vset.pattern.permute.xlu1 %v963_v15  ;;  %v964_v16 = vmov 0.0   ;;  %s676_s15 = sshll.u32 %s949_s21, 3  ;;  %s326_s14 = scalar_lea.vmem [#allocation12], %s670_s30 }
  0x38   : > { %357 = vmatpush.msra.mxu0 %v342_v1  ;;  %390 = vmatpush.xpose.msra.mxu1 %v374_v3  ;;  %v338_v7 = vld [vmem:[#allocation11 + $0x10] sm:$0xff]  ;;  %v337_v8 = vld [vmem:[#allocation11 + $0x8] sm:$0xff]  ;;  %v336_v9 = vld [vmem:[#allocation11] sm:$0xff]  ;;  %371 = vst.msk [vmem:[#allocation4] sm:$0xff] %vm369_vm1, %v964_v16  ;;  %s527_s7 = scalar_lea.hbm %s1176_s5, %s676_s15  ;;  %s529_s11 = sshll.u32 %s326_s14, 4  ;;  %s530_s11 = int_to_ptr.vmem [resolvable:$true] %s529_s11 }
  0x39   : > { %445 = vmatpush.msra.mxu2 %v374_v3  ;;  %v335_v10 = vld [vmem:[%s286_s10] sm:$0xff]  ;;  %765 = vset.pattern.permute.xlu2 %v963_v15  ;;  %v766_v47 = vld [vmem:[%s1174_s3] ss:$0 sm:$0xff]  ;;  %s531_s27 = sshll.u32 %s527_s7, 4  ;;  %s517_s21 = scalar_lea.sflag [#allocation8], %s1101_s12  ;;  %s532_s27 = int_to_ptr.hbm [resolvable:$true] %s531_s27 }
  0x3a   : > { %358 = vmatpush.msra.mxu0 %v341_v2  ;;  %s881_s24 = sshra.s32 %s532_s27, 4  ;;  %s887_s26 = scalar_lea.hbm %s1176_s5, 16  ;;  %s882_s24 = int_to_ptr.hbm [resolvable:$true] %s881_s24 }
  0x3b   : > { %446 = vmatpush.msra.mxu2 %v373_v5  ;;  %s883_s16 = scalar_lea.hbm %s882_s24, 8  ;;  %p888_p10 = scmp.lt.s32.totalorder %s882_s24, %s1176_s5 }
  0x3c   : > { %359 = vmatpush.msra.mxu0 %v340_v4  ;;  %391 = vmatpush.xpose.msra.mxu1 %v373_v5  ;;  %p884_p1 = scmp.ne.s32.totalorder %s882_s24, %s883_s16  ;;  %p889_p12 = scmp.lt.s32.totalorder %s887_s26, %s883_s16 }
  0x3e   : > { %360 = vmatpush.msra.mxu0 %v339_v6  ;;  %v396_v17 = vld [vmem:[#allocation3] sm:$0xff]  ;;  %p885_p4 = pnand %p884_p1, %p1073_p5  ;;  %p890_p13 = por %p889_p12, %p888_p10 }
  0x3f   : > { %v413_v28 = vld [vmem:[#allocation4] sm:$0xff] }
  0x40   : > { %361 = vmatpush.msra.mxu0 %v338_v7  ;;  %p886_p8 = pneg %p885_p4 }
  0x42   : > { %362 = vmatpush.msra.mxu0 %v337_v8  ;;  %p891_p0 = pnand %p890_p13, %p886_p8 }
  0x44   : > { %363 = vmatpush.msra.mxu0 %v336_v9 }
  0x45   : > { %673 = vmatmul.msk.f32.vlgmr.msra.gmra.mxu0 %vm344_vm0, %v335_v10 }
  0xc2   : > { %v365_v11 = vpop.f32.mrf.mxu0 }
  0xc3   : > { %392 = vmatmul.f32.vlgmr.msra.gmra.mxu1 %v365_v11 }
 0x140   : > { %v393_v13 = vpop.f32.mrf.mxu1 }
 0x141   : > { %v398_v14 = vsel %vm397_vm2, %v393_v13, -inf }
 0x142   : > { %399 = vmax.xlane.f32.xlu0 %v398_v14 }
 0x1b5   : > { %v400_v18 = vpop.xlane.xlu0 %399 }
 0x1b6   : > { %v401_v19 = vmax.f32 %v396_v17, %v400_v18 }
 0x1b8   : > { %v402_v20 = vsub.f32 %v396_v17, %v401_v19  ;;  %453 = vst.msk [vmem:[#allocation3] sm:$0xff] %vm369_vm1, %v401_v19  ;;  %407 = vperm.xlu0 %763, %v401_v19  }
 0x1ba   : > { %v403_v26 = vmul.f32 1.442695, %v402_v20 }
 0x22a   : > { %v408_v21 = vpop.permute.xlu0 %407 }
 0x22b   : > { %v410_v22 = vsub.f32 %v393_v13, %v408_v21 }
 0x22d   : > { %v411_v23 = vmul.f32 1.442695, %v410_v22 }
 0x22f   : > { %767 = vpow2.f32 %v411_v23 }
 0x230   : > { %769 = vpow2.f32 %v403_v26 }
 0x235   : > { %v768_v24 = vpop.eup %767 }
 0x236   : > { %674 = vmatmul.msk.f32.vlgmr.msra.gmra.mxu2 %vm397_vm2, %v768_v24  ;;  %v415_v25 = vsel %vm397_vm2, %v768_v24, 0.0  ;;  %v770_v27 = vpop.eup %769 }
 0x237   : > { %416 = vadd.xlane.f32.xlu1 %v415_v25  ;;  %v414_v29 = vmul.f32 %v770_v27, %v413_v28 }
 0x250   : > { %424 = vperm.xlu1 %764, %v770_v27  }
 0x2aa   : > { %v417_v30 = vpop.xlane.xlu1 %416 }
 0x2ab   : > { %v418_v31 = vadd.f32 %v417_v30, %v414_v29 }
 0x2ad   : > { %420 = vst.msk [vmem:[#allocation4] sm:$0xff] %vm369_vm1, %v418_v31 }
 0x2b4   : > { %v458_v32 = vld [vmem:[#allocation4] sm:$0xff] }
 0x2b5   : > { %771 = vrcp.f32 %v458_v32  ;;  %v470_v36 = vand.u32 2147483648, %v458_v32  ;;  %v468_v38 = vand.u32 2147483647, %v458_v32  ;;  %vm464_vm4 = vweird.f32 %v458_v32 }
 0x2b7   : > { %v471_v40 = vor.u32 1.1754944e-38, %v470_v36  ;;  %vm469_vm6 = vcmp.eq.f32.partialorder %v468_v38, 8.507059e+37 }
 0x2b9   : > { %v448_v45 = vpop.f32.mrf.mxu2 }
 0x2bb   : > { %v772_v33 = vpop.eup %771 }
 0x2bc   : > { %v460_v34 = vmul.f32 %v772_v33, %v458_v32  ;;  %vm465_vm3 = vweird.f32 %v772_v33 }
 0x2bd   : > { %vm466_vm5 = vmor %vm464_vm4, %vm465_vm3 }
 0x2be   : > { %v461_v35 = vsub.f32 1.0, %v460_v34 }
 0x2c0   : > { %v462_v37 = vmul.f32 %v772_v33, %v461_v35 }
 0x2c2   : > { %v463_v39 = vadd.f32 %v772_v33, %v462_v37  ;;  %v425_v43 = vpop.permute.xlu1 %424 }
 0x2c3   : > { %v427_v44 = vmul.f32 0.0, %v425_v43 }
 0x2c4   : > { %v467_v41 = vsel %vm466_vm5, %v772_v33, %v463_v39 }
 0x2c5   : > { %v472_v42 = vsel %vm469_vm6, %v471_v40, %v467_v41  ;;  %v451_v46 = vadd.f32 %v448_v45, %v427_v44 }
 0x2c6   : > { %475 = vperm.xlu2 %765, %v472_v42  }
 0x320   : > { %v476_v48 = vpop.permute.xlu2 %475 }
 0x321   : > { %v478_v49 = vmul.f32 %v476_v48, %v451_v46 }
 0x323   : > { %v483_v50 = vsub.f32 %v478_v49, %v766_v47 }
 0x325   : > { %v484_v51 = vmul.f32 %v483_v50, %v483_v50 }
 0x327   : > { %485 = vadd.xlane.f32.xlu2 %v484_v51 }
 0x39a   : > { %v486_v52 = vpop.xlane.xlu2 %485 }
 0x39b   : > { %773 = vrsqrt.f32 %v486_v52  ;;  %vm494_vm7 = vcmp.eq.f32.partialorder %v486_v52, inf  ;;  %v497_v60 = vand.u32 2147483648, %v486_v52  ;;  %vm496_vm8 = vcmp.eq.f32.partialorder %v486_v52, 0.0 }
 0x3a1   : > { %v774_v53 = vpop.eup %773 }
 0x3a2   : > { %v488_v54 = vmul.f32 %v774_v53, %v486_v52 }
 0x3a4   : > { %v489_v55 = vmul.f32 %v774_v53, %v488_v54 }
 0x3a6   : > { %v490_v56 = vmul.f32 0.5, %v489_v55 }
 0x3a8   : > { %v491_v57 = vsub.f32 1.5, %v490_v56 }
 0x3aa   : > { %v492_v58 = vmul.f32 %v774_v53, %v491_v57 }
 0x3ac   : > { %v493_v59 = vmul.f32 %v492_v58, %v486_v52 }
 0x3ae   : > { %v495_v61 = vsel %vm494_vm7, %v486_v52, %v493_v59 }
 0x3af   : > { %v498_v62 = vsel %vm496_vm8, %v497_v60, %v495_v61 }
 0x3b0   : > { %v499_v63 = vmax.f32 %v498_v62, 1e-12 }
 0x3b2   : > { %775 = vrcp.f32 %v499_v63  ;;  %v511_v3 = vand.u32 2147483648, %v499_v63  ;;  %v509_v5 = vand.u32 2147483647, %v499_v63  ;;  %vm505_vm10 = vweird.f32 %v499_v63 }
 0x3b4   : > { %v512_v7 = vor.u32 1.1754944e-38, %v511_v3  ;;  %vm510_vm12 = vcmp.eq.f32.partialorder %v509_v5, 8.507059e+37 }
 0x3b8   : > { %v776_v0 = vpop.eup %775 }
 0x3b9   : > { %v501_v1 = vmul.f32 %v776_v0, %v499_v63  ;;  %vm506_vm9 = vweird.f32 %v776_v0 }
 0x3ba   : > { %vm507_vm11 = vmor %vm505_vm10, %vm506_vm9 }
 0x3bb   : > { %v502_v2 = vsub.f32 1.0, %v501_v1 }
 0x3bd   : > { %v503_v4 = vmul.f32 %v776_v0, %v502_v2 }
 0x3bf   : > { %v504_v6 = vadd.f32 %v776_v0, %v503_v4 }
 0x3c1   : > { %v508_v8 = vsel %vm507_vm11, %v776_v0, %v504_v6 }
 0x3c2   : > { %v513_v9 = vsel %vm510_vm12, %v512_v7, %v508_v8 }
 0x3c3   : > { %v514_v10 = vmul.f32 %v513_v9, %v483_v50 }
 0x3c5   : > { %515 = vst [vmem:[%s326_s14] sm:$0xff] %v514_v10 }
 0x3c6   : > { %894 = shalt.err (!%p891_p0)
}
 0x3c7   : > { %688 = dma.vmem_to_hbm [thread:$0]  (%p1073_p5), %s530_s11, 128, %s532_s27, %s517_s21  }
 0x3c8 PF: > { %s543_s2 = sand.u32 1, %s937_s18   ;;  %p702_p3 = pnand %p662_p11, %p1040_p6 }
 0x3c9   : > { %s544_s30 = scalar_lea.sflag [#allocation8], %s543_s2 }
 0x3ca   : > { %p703_p7 = pneg %p702_p3 }
 0x3cc   : > { %932 = dma.done.wait (%p703_p7), %s544_s30, 128  }
 0x3cd   : > { %934 = vsyncadd (%p703_p7), %s544_s30, 4294967168  ;;  %s24_s4 = sadd.s32 1, %s957_s4   ;;  %s1196_s9 = sld [smem:[#allocation17_spill]] }
 0x3ce   : > { %p21_p9 = scmp.ge.s32.totalorder %s24_s4, 4   ;;  %s1197_s20 = sld [smem:[#allocation20_spill]] }
 0x3cf   : > { %s1198_s13 = sld [smem:[#allocation19_spill]]  ;;  %s1199_s18 = smov %s941_s19 }
 0x3d0   : > { %s1201_s21 = smov %s953_s22 }
 0x3d1   :  { %23 = sbr.rel (!%p21_p9) target bundleno = 10 (0xa), region = 113 }
 0x3d3   : > { %s1200_s19 = smov %s1196_s9 }
 0x3d5   : > { %s1202_s22 = smov %s1198_s13 }
 0x3d6   :  { %550 = vsyncpa [#allocation7], 1 }
 0x3d7   :  { %552 = vsyncpa [#allocation7 + $0x1], 1 }
 0x3d8   :  { %553 = vsyncpa [#allocation10], 1 }
 0x3d9   :  { %555 = vsyncpa [#allocation10 + $0x1], 1 }
 0x3da   :  { %556 = vsyncpa [#allocation8], 1 }
 0x3db   :  { %558 = vsyncpa [#allocation8 + $0x1], 1 }

</bundles_post_ra>
